<compile_context>
chip_gen: v5e
topology: v5e:2x2
jax: 0.10.0
libtpu: 0.0.40
codegen_flags: <defaults>
</compile_context>

<pallas_src>
import jax
import jax.numpy as jnp
from jax import lax
from jax.experimental import pallas as pl
from jax.experimental.pallas import tpu as pltpu

HIDDEN = 32      # hidden_size (small-shape stand-in for 512)
MAX_LEN = 16     # max_length   (small-shape stand-in for 60)
VOCAB = 64       # output_size
LANES = 128
OUT_PAD = LANES - (VOCAB + HIDDEN + MAX_LEN)   # 16 padding lanes in fused output

# ---- row offsets inside the packed bf16 weight slab [W_ROWS, 128] --------------
R_EPACK = 0 * HIDDEN      # [H, L+H ] : W_attn_e | W_comb_e          (emb-only, hoistable)
R_HPACK = 1 * HIDDEN      # [H, L+3H] : W_attn_h | W_hr | W_hz | W_hn (all hid-only dots fused)
R_COMB_A = 2 * HIDDEN     # [H, H   ] : attn_combine, attn_applied half
R_IPACK = 3 * HIDDEN      # [H, 3H  ] : W_ir | W_iz | W_in
R_OUT = 4 * HIDDEN        # [H, V   ] : out^T
W_ROWS = 5 * HIDDEN       # 160 rows * 128 lanes * bf16 = 40 KiB

# ---- rows of the f32 bias slab [8, 128] -----------------------------------------
BR_ATTN, BR_COMB, BR_R, BR_Z, BR_IN, BR_HN, BR_OUT = range(7)
B_ROWS = 8


# ------------------------------ shared kernel math ------------------------------
def _bdot(a, b):
    """bf16 x bf16 matmul with f32 accumulation (MXU native rate on v5e/v6e/v7x)."""
    return jnp.dot(a.astype(jnp.bfloat16), b.astype(jnp.bfloat16),
                   preferred_element_type=jnp.float32)


def _step_core(epre, hid, enc, w_ref, b_ref):
    """One decoder step, given the precomputed emb-only projections.

    epre: [1, L+H] f32  (= emb @ [W_attn_e | W_comb_e])
    hid : [1, H]   f32
    enc : [L, H]   bf16
    Returns logp [1,V], h_new [1,H], attn_w [1,L]  (all f32).
    """
    H, L, V = HIDDEN, MAX_LEN, VOCAB

    # All hidden-dependent projections fused into ONE dot: [1,H] @ [H, L+3H].
    hproj = _bdot(hid, w_ref[R_HPACK:R_HPACK + H, :L + 3 * H])       # [1, L+3H]

    # attn_weights = softmax(Linear(cat(embedded, hidden)))
    logits = epre[:, :L] + hproj[:, :L] + b_ref[BR_ATTN:BR_ATTN + 1, :L]   # [1, L]
    m = jnp.max(logits, axis=-1, keepdims=True)
    e = jnp.exp(logits - m)
    inv = pl.reciprocal(jnp.sum(e, axis=-1, keepdims=True), approx=True)   # EUP slot
    attn_w = e * inv                                                       # [1, L]

    # attn_applied = attn_weights @ encoder_outputs
    applied = _bdot(attn_w, enc)                                           # [1, H]

    # x = relu(attn_combine(cat(embedded, attn_applied)))
    comb = (epre[:, L:L + H]
            + _bdot(applied, w_ref[R_COMB_A:R_COMB_A + H, :H])
            + b_ref[BR_COMB:BR_COMB + 1, :H])
    x = jnp.maximum(comb, 0.0)                                             # [1, H]

    # Single-step GRU cell (PyTorch gate order r, z, n); ih gates in ONE dot,
    # hh gates already live in hproj lanes L:L+3H.
    gi = _bdot(x, w_ref[R_IPACK:R_IPACK + H, :3 * H])                      # [1, 3H]
    gh = hproj[:, L:L + 3 * H]                                             # [1, 3H]
    r = jax.nn.sigmoid(gi[:, 0 * H:1 * H] + gh[:, 0 * H:1 * H] + b_ref[BR_R:BR_R + 1, :H])
    z = jax.nn.sigmoid(gi[:, 1 * H:2 * H] + gh[:, 1 * H:2 * H] + b_ref[BR_Z:BR_Z + 1, :H])
    n = jnp.tanh(gi[:, 2 * H:3 * H] + b_ref[BR_IN:BR_IN + 1, :H]
                 + r * (gh[:, 2 * H:3 * H] + b_ref[BR_HN:BR_HN + 1, :H]))
    h_new = (1.0 - z) * n + z * hid                                        # [1, H]

    # output = log_softmax(out(h_new))
    o = _bdot(h_new, w_ref[R_OUT:R_OUT + H, :V]) + b_ref[BR_OUT:BR_OUT + 1, :V]
    om = jnp.max(o, axis=-1, keepdims=True)
    osh = o - om
    lse = jnp.log(jnp.sum(jnp.exp(osh), axis=-1, keepdims=True))
    return osh - lse, h_new, attn_w


def _fuse_outputs(logp, h_new, attn_w):
    pad = jnp.zeros((logp.shape[0], OUT_PAD), jnp.float32)
    return jnp.concatenate([logp, h_new, attn_w, pad], axis=-1)            # [1, 128]


# ------------------------------ single-step kernel ------------------------------
def _decoder_step_kernel(emb_ref, hid_ref, enc_ref, w_ref, b_ref, out_ref):
    H, L = HIDDEN, MAX_LEN
    epre = _bdot(emb_ref[...], w_ref[R_EPACK:R_EPACK + H, :L + H])         # [1, L+H]
    logp, h_new, attn_w = _step_core(epre, hid_ref[...], enc_ref[...], w_ref, b_ref)
    out_ref[...] = _fuse_outputs(logp, h_new, attn_w)                      # one lane-dense row


# -------------------- fused multi-step (whole decode loop) kernel ---------------
def _decoder_seq_kernel(emb_ref, hid0_ref, enc_ref, w_ref, b_ref, out_ref, epre_ref):
    """One grid program = one full sequence.  No time grid: T steps run in an
    in-kernel fori_loop with everything resident in VMEM."""
    H, L = HIDDEN, MAX_LEN
    T = emb_ref.shape[0]

    # Hoisted emb-only projections: ONE [T,H] x [H, L+H] matmul for the whole
    # sequence (T sublanes) instead of 2 extra M=1 dots per step.
    epre_ref[...] = _bdot(emb_ref[...], w_ref[R_EPACK:R_EPACK + H, :L + H])

    enc = enc_ref[...]                         # [L, H] bf16, loaded once

    def step(t, hid):
        epre_t = epre_ref[pl.ds(t, 1), :]      # [1, L+H]
        logp, h_new, attn_w = _step_core(epre_t, hid, enc, w_ref, b_ref)
        out_ref[pl.ds(t, 1), :] = _fuse_outputs(logp, h_new, attn_w)
        return h_new                           # hidden carried in vregs

    # T is small & static here -> full unroll; use a small int unroll for long T.
    lax.fori_loop(0, T, step, hid0_ref[...], unroll=True)


# ------------------------------ parameters --------------------------------------
def make_params(key, hidden=HIDDEN, vocab=VOCAB, max_len=MAX_LEN):
    ks = jax.random.split(key, 11)
    s = 0.1
    return {
        "embedding": jax.random.normal(ks[0], (vocab, hidden), jnp.float32) * s,
        # nn.Linear(2H, L): weight [L, 2H], bias [L]
        "attn_w": jax.random.normal(ks[1], (max_len, 2 * hidden), jnp.float32) * s,
        "attn_b": jax.random.normal(ks[2], (max_len,), jnp.float32) * s,
        # nn.Linear(2H, H)
        "comb_w": jax.random.normal(ks[3], (hidden, 2 * hidden), jnp.float32) * s,
        "comb_b": jax.random.normal(ks[4], (hidden,), jnp.float32) * s,
        # nn.GRU(H, H): weight_ih [3H, H], weight_hh [3H, H], biases [3H]
        "gru_w_ih": jax.random.normal(ks[5], (3 * hidden, hidden), jnp.float32) * s,
        "gru_w_hh": jax.random.normal(ks[6], (3 * hidden, hidden), jnp.float32) * s,
        "gru_b_ih": jax.random.normal(ks[7], (3 * hidden,), jnp.float32) * s,
        "gru_b_hh": jax.random.normal(ks[8], (3 * hidden,), jnp.float32) * s,
        # nn.Linear(H, V)
        "out_w": jax.random.normal(ks[9], (vocab, hidden), jnp.float32) * s,
        "out_b": jax.random.normal(ks[10], (vocab,), jnp.float32) * s,
    }


def prepare_params(params):
    """One-time prep (NOT per step): transpose/split/fuse every Linear/GRU weight
    into a single 128-lane bf16 slab + an f32 bias slab + bf16 embedding table."""
    H, L, V = HIDDEN, MAX_LEN, VOCAB

    w_attn = params["attn_w"].T.astype(jnp.float32)   # [2H, L]
    w_comb = params["comb_w"].T.astype(jnp.float32)   # [2H, H]
    w_ih = params["gru_w_ih"].T.astype(jnp.float32)   # [H, 3H] columns r|z|n
    w_hh = params["gru_w_hh"].T.astype(jnp.float32)   # [H, 3H] columns r|z|n
    w_out = params["out_w"].T.astype(jnp.float32)     # [H, V]
    b_ih, b_hh = params["gru_b_ih"], params["gru_b_hh"]

    def pad_lanes(m):
        return jnp.pad(m, ((0, 0), (0, LANES - m.shape[1])))

    epack = jnp.concatenate([w_attn[:H], w_comb[:H]], axis=1)   # [H, L+H]
    hpack = jnp.concatenate([w_attn[H:], w_hh], axis=1)         # [H, L+3H]
    blocks = [epack, hpack, w_comb[H:], w_ih, w_out]
    w_slab = jnp.concatenate([pad_lanes(b) for b in blocks], axis=0).astype(jnp.bfloat16)
    assert w_slab.shape == (W_ROWS, LANES)

    def bias_row(v, width):
        return jnp.zeros((1, LANES), jnp.float32).at[0, :width].set(
            jnp.asarray(v, jnp.float32))

    b_slab = jnp.concatenate([
        bias_row(params["attn_b"], L),                  # BR_ATTN
        bias_row(params["comb_b"], H),                  # BR_COMB
        bias_row(b_ih[0:H] + b_hh[0:H], H),             # BR_R  (pre-summed)
        bias_row(b_ih[H:2 * H] + b_hh[H:2 * H], H),     # BR_Z  (pre-summed)
        bias_row(b_ih[2 * H:3 * H], H),                 # BR_IN (must stay separate)
        bias_row(b_hh[2 * H:3 * H], H),                 # BR_HN (inside r * (...))
        bias_row(params["out_b"], V),                   # BR_OUT
        jnp.zeros((1, LANES), jnp.float32),
    ], axis=0)
    assert b_slab.shape == (B_ROWS, LANES)

    return {"embedding": params["embedding"].astype(jnp.bfloat16),
            "w_slab": w_slab, "b_slab": b_slab}


# ------------------------------ wrappers -----------------------------------------
_VMEM = pl.BlockSpec(memory_space=pltpu.MemorySpace.VMEM)


def _split_fused(fused):
    H, L, V = HIDDEN, MAX_LEN, VOCAB
    return fused[:, :V], fused[:, V:V + H], fused[:, V + H:V + H + L]


@jax.jit
def attn_decoder_forward(input_token, hidden, encoder_outputs, prepped):
    """Single decoder step == AttnDecoderRNN.forward.
    input_token: int32 scalar, hidden: [1,1,H], encoder_outputs: [L,H].
    For decode loops use attn_decoder_decode_sequence (never a Python loop here)."""
    H = HIDDEN
    emb = prepped["embedding"][input_token].reshape(1, H)        # bf16
    # TODO(synk): nn.Dropout(p=0.1) is identity in eval mode; training-mode dropout not implemented.
    hid = hidden.reshape(1, H).astype(jnp.float32)

    fused = pl.pallas_call(
        _decoder_step_kernel,
        out_shape=jax.ShapeDtypeStruct((1, LANES), jnp.float32),
        in_specs=[_VMEM, _VMEM, _VMEM, _VMEM, _VMEM],
        out_specs=_VMEM,
    )(emb, hid, encoder_outputs.astype(jnp.bfloat16),
      prepped["w_slab"], prepped["b_slab"])

    logp, h_new, attn_w = _split_fused(fused)
    return logp, h_new.reshape(1, 1, H), attn_w


@jax.jit
def attn_decoder_decode_sequence(tokens, hidden0, encoder_outputs, prepped):
    """Teacher-forced decode of B independent sequences of length T.
    tokens: [B,T] int32, hidden0: [B,1,H], encoder_outputs: [B,L,H].
    One pallas_call total: batch axis is a 'parallel' grid (2nd TC on v7x),
    the T time steps run sequentially inside the kernel with everything resident."""
    H, L, V = HIDDEN, MAX_LEN, VOCAB
    B, T = tokens.shape
    assert T >= 1, "decode length must be >= 1"
    emb_seq = prepped["embedding"][tokens]                       # [B,T,H] bf16 (one gather)
    hid0 = hidden0.reshape(B, 1, H).astype(jnp.float32)
    enc = encoder_outputs.astype(jnp.bfloat16)                   # [B,L,H]

    fused = pl.pallas_call(
        _decoder_seq_kernel,
        grid=(B,),
        in_specs=[
            pl.BlockSpec((None, T, H), lambda b: (b, 0, 0)),        # embedded tokens (per seq)
            pl.BlockSpec((None, 1, H), lambda b: (b, 0, 0)),        # initial hidden (per seq)
            pl.BlockSpec((None, L, H), lambda b: (b, 0, 0)),        # encoder outputs (per seq)
            pl.BlockSpec((W_ROWS, LANES), lambda b: (0, 0)),        # packed weights (resident)
            pl.BlockSpec((B_ROWS, LANES), lambda b: (0, 0)),        # packed biases  (resident)
        ],
        out_specs=pl.BlockSpec((None, T, LANES), lambda b: (b, 0, 0)),
        out_shape=jax.ShapeDtypeStruct((B, T, LANES), jnp.float32),  # single lane-dense slab
        scratch_shapes=[pltpu.VMEM((T, L + H), jnp.float32)],        # hoisted emb projections
        compiler_params=pltpu.CompilerParams(dimension_semantics=("parallel",)),
    )(emb_seq, hid0, enc, prepped["w_slab"], prepped["b_slab"])

    logp_seq = fused[:, :, :V]                                   # [B,T,V]
    attn_seq = fused[:, :, V + H:V + H + L]                      # [B,T,L]
    h_last = fused[:, T - 1, V:V + H].reshape(B, 1, 1, H)        # recovered from last row
    return logp_seq, h_last, attn_seq


# ------------------------------ pure-JAX reference --------------------------------
def reference_step(input_token, hidden, enc, params):
    H = HIDDEN
    emb = params["embedding"][input_token].reshape(1, H)
    hid = hidden.reshape(1, H)
    logits = jnp.concatenate([emb, hid], axis=1) @ params["attn_w"].T + params["attn_b"]
    attn_w = jax.nn.softmax(logits, axis=1)
    applied = attn_w @ enc
    x = jnp.maximum(jnp.concatenate([emb, applied], axis=1) @ params["comb_w"].T
                    + params["comb_b"], 0.0)
    gx = x @ params["gru_w_ih"].T + params["gru_b_ih"]
    gh = hid @ params["gru_w_hh"].T + params["gru_b_hh"]
    r = jax.nn.sigmoid(gx[:, :H] + gh[:, :H])
    z = jax.nn.sigmoid(gx[:, H:2 * H] + gh[:, H:2 * H])
    n = jnp.tanh(gx[:, 2 * H:] + r * gh[:, 2 * H:])
    h_new = (1.0 - z) * n + z * hid
    logp = jax.nn.log_softmax(h_new @ params["out_w"].T + params["out_b"], axis=1)
    return logp, h_new.reshape(1, 1, H), attn_w


# ------------------------------ demo / self-check ---------------------------------
if __name__ == "__main__":
    key = jax.random.PRNGKey(0)
    pkey, hkey, ekey, tkey = jax.random.split(key, 4)

    params = make_params(pkey)
    prepped = prepare_params(params)          # one-time weight transpose / fuse / pack

    # ---- single step (matches the module's forward) ----
    input_token = jnp.array(3, dtype=jnp.int32)
    hidden = jax.random.normal(hkey, (1, 1, HIDDEN), jnp.float32) * 0.1
    enc1 = jax.random.normal(ekey, (MAX_LEN, HIDDEN), jnp.float32) * 0.1

    logp, new_hidden, attn_weights = attn_decoder_forward(
        input_token, hidden, enc1, prepped)
    jax.block_until_ready((logp, new_hidden, attn_weights))

    assert logp.shape == (1, VOCAB)
    assert new_hidden.shape == (1, 1, HIDDEN)
    assert attn_weights.shape == (1, MAX_LEN)
    assert abs(float(jnp.sum(jnp.exp(logp))) - 1.0) < 5e-3
    assert abs(float(jnp.sum(attn_weights)) - 1.0) < 5e-3

    logp_r, hid_r, attn_r = reference_step(input_token, hidden, enc1, params)
    assert jnp.allclose(logp, logp_r, atol=1e-2, rtol=1e-2)
    assert jnp.allclose(new_hidden, hid_r, atol=1e-2, rtol=1e-2)
    assert jnp.allclose(attn_weights, attn_r, atol=1e-2, rtol=1e-2)

    # ---- fused batched sequence decode: B sequences x T steps in ONE pallas_call ----
    B, T = 2, 8
    tokens = jax.random.randint(tkey, (B, T), 0, VOCAB, dtype=jnp.int32)
    hidden0 = jax.random.normal(hkey, (B, 1, HIDDEN), jnp.float32) * 0.1
    enc_b = jax.random.normal(ekey, (B, MAX_LEN, HIDDEN), jnp.float32) * 0.1

    logp_seq, h_last, attn_seq = attn_decoder_decode_sequence(
        tokens, hidden0, enc_b, prepped)
    jax.block_until_ready((logp_seq, h_last, attn_seq))

    assert logp_seq.shape == (B, T, VOCAB)
    assert attn_seq.shape == (B, T, MAX_LEN)
    assert h_last.shape == (B, 1, 1, HIDDEN)

    # must match iterating the pure-JAX (f32) reference step-by-step
    for b in range(B):
        hid_i = hidden0[b].reshape(1, 1, HIDDEN)
        for t in range(T):
            lp_r, hid_i, aw_r = reference_step(tokens[b, t], hid_i, enc_b[b], params)
            assert jnp.allclose(logp_seq[b, t], lp_r[0], atol=2e-2, rtol=2e-2)
            assert jnp.allclose(attn_seq[b, t], aw_r[0], atol=2e-2, rtol=2e-2)
        assert jnp.allclose(h_last[b].reshape(1, HIDDEN), hid_i.reshape(1, HIDDEN),
                            atol=2e-2, rtol=2e-2)

    print("KERNEL_OK")
</pallas_src>

<mosaic_0001>
module attributes {stable_mosaic.version = 11 : i64} {
  func.func @_decoder_step_kernel(%arg0: memref<1x32xbf16, #tpu.memory_space<vmem>>, %arg1: memref<1x32xf32, #tpu.memory_space<vmem>>, %arg2: memref<16x32xbf16, #tpu.memory_space<vmem>>, %arg3: memref<160x128xbf16, #tpu.memory_space<vmem>>, %arg4: memref<8x128xf32, #tpu.memory_space<vmem>>, %arg5: memref<1x128xf32, #tpu.memory_space<vmem>>) attributes {dimension_semantics = [], scalar_prefetch = 0 : i64, scratch_operands = 0 : i64, tpu.core_type = #tpu.core_type<tc>} {
    %c0 = arith.constant 0 : index
    %c0_0 = arith.constant 0 : index
    %0 = vector.load %arg0[%c0, %c0_0] : memref<1x32xbf16, #tpu.memory_space<vmem>>, vector<1x32xbf16>
    %c0_1 = arith.constant 0 : index
    %c0_2 = arith.constant 0 : index
    %1 = vector.load %arg3[%c0_1, %c0_2] : memref<160x128xbf16, #tpu.memory_space<vmem>>, vector<32x48xbf16>
    %cst = arith.constant dense<0.000000e+00> : vector<1x48xf32>
    %2 = tpu.matmul %0, %1, %cst {dimension_numbers = #tpu.dot_dimension_numbers<[1], [0], [0], [1], [0, 0, 1, 1], [], []>} : vector<1x32xbf16>, vector<32x48xbf16>, vector<1x48xf32> -> vector<1x48xf32>
    %c0_3 = arith.constant 0 : index
    %c0_4 = arith.constant 0 : index
    %3 = vector.load %arg1[%c0_3, %c0_4] : memref<1x32xf32, #tpu.memory_space<vmem>>, vector<1x32xf32>
    %c0_5 = arith.constant 0 : index
    %c0_6 = arith.constant 0 : index
    %4 = vector.load %arg2[%c0_5, %c0_6] : memref<16x32xbf16, #tpu.memory_space<vmem>>, vector<16x32xbf16>
    %c32 = arith.constant 32 : index
    %c0_7 = arith.constant 0 : index
    %5 = vector.load %arg3[%c32, %c0_7] : memref<160x128xbf16, #tpu.memory_space<vmem>>, vector<32x112xbf16>
    %6 = arith.truncf %3 : vector<1x32xf32> to vector<1x32xbf16>
    %cst_8 = arith.constant dense<0.000000e+00> : vector<1x112xf32>
    %7 = tpu.matmul %6, %5, %cst_8 {dimension_numbers = #tpu.dot_dimension_numbers<[1], [0], [0], [1], [0, 0, 1, 1], [], []>} : vector<1x32xbf16>, vector<32x112xbf16>, vector<1x112xf32> -> vector<1x112xf32>
    %8 = vector.extract_strided_slice %2 {offsets = [0, 0], sizes = [1, 16], strides = [1, 1]} : vector<1x48xf32> to vector<1x16xf32>
    %9 = vector.extract_strided_slice %7 {offsets = [0, 0], sizes = [1, 16], strides = [1, 1]} : vector<1x112xf32> to vector<1x16xf32>
    %10 = arith.addf %8, %9 : vector<1x16xf32>
    %c0_9 = arith.constant 0 : index
    %c0_10 = arith.constant 0 : index
    %11 = vector.load %arg4[%c0_9, %c0_10] : memref<8x128xf32, #tpu.memory_space<vmem>>, vector<1x16xf32>
    %12 = arith.addf %10, %11 : vector<1x16xf32>
    %cst_11 = arith.constant dense<0xFF800000> : vector<1xf32>
    %13 = vector.multi_reduction <maximumf>, %12, %cst_11 [1] : vector<1x16xf32> to vector<1xf32>
    %14 = vector.shape_cast %13 : vector<1xf32> to vector<1x1xf32>
    %15 = vector.broadcast %14 : vector<1x1xf32> to vector<1x16xf32>
    %16 = arith.subf %12, %15 : vector<1x16xf32>
    %17 = math.exp %16 : vector<1x16xf32>
    %cst_12 = arith.constant dense<0.000000e+00> : vector<1xf32>
    %18 = vector.multi_reduction <add>, %17, %cst_12 [1] : vector<1x16xf32> to vector<1xf32>
    %19 = vector.shape_cast %18 : vector<1xf32> to vector<1x1xf32>
    %20 = tpu.reciprocal %19 {approx = true} : vector<1x1xf32> -> vector<1x1xf32>
    %21 = vector.broadcast %20 : vector<1x1xf32> to vector<1x16xf32>
    %22 = arith.mulf %17, %21 : vector<1x16xf32>
    %23 = arith.truncf %22 : vector<1x16xf32> to vector<1x16xbf16>
    %cst_13 = arith.constant dense<0.000000e+00> : vector<1x32xf32>
    %24 = tpu.matmul %23, %4, %cst_13 {dimension_numbers = #tpu.dot_dimension_numbers<[1], [0], [0], [1], [0, 0, 1, 1], [], []>} : vector<1x16xbf16>, vector<16x32xbf16>, vector<1x32xf32> -> vector<1x32xf32>
    %25 = vector.extract_strided_slice %2 {offsets = [0, 16], sizes = [1, 32], strides = [1, 1]} : vector<1x48xf32> to vector<1x32xf32>
    %c64 = arith.constant 64 : index
    %c0_14 = arith.constant 0 : index
    %26 = vector.load %arg3[%c64, %c0_14] : memref<160x128xbf16, #tpu.memory_space<vmem>>, vector<32x32xbf16>
    %27 = arith.truncf %24 : vector<1x32xf32> to vector<1x32xbf16>
    %cst_15 = arith.constant dense<0.000000e+00> : vector<1x32xf32>
    %28 = tpu.matmul %27, %26, %cst_15 {dimension_numbers = #tpu.dot_dimension_numbers<[1], [0], [0], [1], [0, 0, 1, 1], [], []>} : vector<1x32xbf16>, vector<32x32xbf16>, vector<1x32xf32> -> vector<1x32xf32>
    %29 = arith.addf %25, %28 : vector<1x32xf32>
    %c1 = arith.constant 1 : index
    %c0_16 = arith.constant 0 : index
    %30 = vector.load %arg4[%c1, %c0_16] : memref<8x128xf32, #tpu.memory_space<vmem>>, vector<1x32xf32>
    %31 = arith.addf %29, %30 : vector<1x32xf32>
    %cst_17 = arith.constant 0.000000e+00 : f32
    %32 = vector.broadcast %cst_17 : f32 to vector<1x32xf32>
    %33 = arith.maximumf %31, %32 : vector<1x32xf32>
    %c96 = arith.constant 96 : index
    %c0_18 = arith.constant 0 : index
    %34 = vector.load %arg3[%c96, %c0_18] : memref<160x128xbf16, #tpu.memory_space<vmem>>, vector<32x96xbf16>
    %35 = arith.truncf %33 : vector<1x32xf32> to vector<1x32xbf16>
    %cst_19 = arith.constant dense<0.000000e+00> : vector<1x96xf32>
    %36 = tpu.matmul %35, %34, %cst_19 {dimension_numbers = #tpu.dot_dimension_numbers<[1], [0], [0], [1], [0, 0, 1, 1], [], []>} : vector<1x32xbf16>, vector<32x96xbf16>, vector<1x96xf32> -> vector<1x96xf32>
    %37 = vector.extract_strided_slice %7 {offsets = [0, 16], sizes = [1, 96], strides = [1, 1]} : vector<1x112xf32> to vector<1x96xf32>
    %38 = vector.extract_strided_slice %36 {offsets = [0, 0], sizes = [1, 32], strides = [1, 1]} : vector<1x96xf32> to vector<1x32xf32>
    %39 = vector.extract_strided_slice %37 {offsets = [0, 0], sizes = [1, 32], strides = [1, 1]} : vector<1x96xf32> to vector<1x32xf32>
    %40 = arith.addf %38, %39 : vector<1x32xf32>
    %c2 = arith.constant 2 : index
    %c0_20 = arith.constant 0 : index
    %41 = vector.load %arg4[%c2, %c0_20] : memref<8x128xf32, #tpu.memory_space<vmem>>, vector<1x32xf32>
    %42 = arith.addf %40, %41 : vector<1x32xf32>
    %43 = arith.negf %42 : vector<1x32xf32>
    %44 = math.exp %43 : vector<1x32xf32>
    %cst_21 = arith.constant 1.000000e+00 : f32
    %45 = vector.broadcast %cst_21 : f32 to vector<1x32xf32>
    %46 = arith.addf %45, %44 : vector<1x32xf32>
    %47 = arith.divf %45, %46 : vector<1x32xf32>
    %48 = vector.extract_strided_slice %36 {offsets = [0, 32], sizes = [1, 32], strides = [1, 1]} : vector<1x96xf32> to vector<1x32xf32>
    %49 = vector.extract_strided_slice %37 {offsets = [0, 32], sizes = [1, 32], strides = [1, 1]} : vector<1x96xf32> to vector<1x32xf32>
    %50 = arith.addf %48, %49 : vector<1x32xf32>
    %c3 = arith.constant 3 : index
    %c0_22 = arith.constant 0 : index
    %51 = vector.load %arg4[%c3, %c0_22] : memref<8x128xf32, #tpu.memory_space<vmem>>, vector<1x32xf32>
    %52 = arith.addf %50, %51 : vector<1x32xf32>
    %53 = arith.negf %52 : vector<1x32xf32>
    %54 = math.exp %53 : vector<1x32xf32>
    %cst_23 = arith.constant 1.000000e+00 : f32
    %55 = vector.broadcast %cst_23 : f32 to vector<1x32xf32>
    %56 = arith.addf %55, %54 : vector<1x32xf32>
    %57 = arith.divf %55, %56 : vector<1x32xf32>
    %58 = vector.extract_strided_slice %36 {offsets = [0, 64], sizes = [1, 32], strides = [1, 1]} : vector<1x96xf32> to vector<1x32xf32>
    %c4 = arith.constant 4 : index
    %c0_24 = arith.constant 0 : index
    %59 = vector.load %arg4[%c4, %c0_24] : memref<8x128xf32, #tpu.memory_space<vmem>>, vector<1x32xf32>
    %60 = arith.addf %58, %59 : vector<1x32xf32>
    %61 = vector.extract_strided_slice %37 {offsets = [0, 64], sizes = [1, 32], strides = [1, 1]} : vector<1x96xf32> to vector<1x32xf32>
    %c5 = arith.constant 5 : index
    %c0_25 = arith.constant 0 : index
    %62 = vector.load %arg4[%c5, %c0_25] : memref<8x128xf32, #tpu.memory_space<vmem>>, vector<1x32xf32>
    %63 = arith.addf %61, %62 : vector<1x32xf32>
    %64 = arith.mulf %47, %63 : vector<1x32xf32>
    %65 = arith.addf %60, %64 : vector<1x32xf32>
    %66 = math.tanh %65 : vector<1x32xf32>
    %cst_26 = arith.constant 1.000000e+00 : f32
    %67 = vector.broadcast %cst_26 : f32 to vector<1x32xf32>
    %68 = arith.subf %67, %57 : vector<1x32xf32>
    %69 = arith.mulf %68, %66 : vector<1x32xf32>
    %70 = arith.mulf %57, %3 : vector<1x32xf32>
    %71 = arith.addf %69, %70 : vector<1x32xf32>
    %c128 = arith.constant 128 : index
    %c0_27 = arith.constant 0 : index
    %72 = vector.load %arg3[%c128, %c0_27] : memref<160x128xbf16, #tpu.memory_space<vmem>>, vector<32x64xbf16>
    %73 = arith.truncf %71 : vector<1x32xf32> to vector<1x32xbf16>
    %cst_28 = arith.constant dense<0.000000e+00> : vector<1x64xf32>
    %74 = tpu.matmul %73, %72, %cst_28 {dimension_numbers = #tpu.dot_dimension_numbers<[1], [0], [0], [1], [0, 0, 1, 1], [], []>} : vector<1x32xbf16>, vector<32x64xbf16>, vector<1x64xf32> -> vector<1x64xf32>
    %c6 = arith.constant 6 : index
    %c0_29 = arith.constant 0 : index
    %75 = vector.load %arg4[%c6, %c0_29] : memref<8x128xf32, #tpu.memory_space<vmem>>, vector<1x64xf32>
    %76 = arith.addf %74, %75 : vector<1x64xf32>
    %cst_30 = arith.constant dense<0xFF800000> : vector<1xf32>
    %77 = vector.multi_reduction <maximumf>, %76, %cst_30 [1] : vector<1x64xf32> to vector<1xf32>
    %78 = vector.shape_cast %77 : vector<1xf32> to vector<1x1xf32>
    %79 = vector.broadcast %78 : vector<1x1xf32> to vector<1x64xf32>
    %80 = arith.subf %76, %79 : vector<1x64xf32>
    %81 = math.exp %80 : vector<1x64xf32>
    %cst_31 = arith.constant dense<0.000000e+00> : vector<1xf32>
    %82 = vector.multi_reduction <add>, %81, %cst_31 [1] : vector<1x64xf32> to vector<1xf32>
    %83 = vector.shape_cast %82 : vector<1xf32> to vector<1x1xf32>
    %84 = math.log %83 : vector<1x1xf32>
    %85 = vector.broadcast %84 : vector<1x1xf32> to vector<1x64xf32>
    %86 = arith.subf %80, %85 : vector<1x64xf32>
    %cst_32 = arith.constant 0.000000e+00 : f32
    %87 = vector.broadcast %cst_32 : f32 to vector<1x16xf32>
    %88 = tpu.concatenate %86, %71, %22, %87 in 1 : vector<1x64xf32>, vector<1x32xf32>, vector<1x16xf32>, vector<1x16xf32> -> vector<1x128xf32>
    %c0_33 = arith.constant 0 : index
    %c0_34 = arith.constant 0 : index
    %89 = vector.load %arg5[%c0_33, %c0_34] : memref<1x128xf32, #tpu.memory_space<vmem>>, vector<1x128xf32>
    tpu.vector_store %arg5[%c0_33, %c0_34], %88 {strides = array<i32>} : memref<1x128xf32, #tpu.memory_space<vmem>>, vector<1x128xf32>,
    return
  }
}

</mosaic_0001>

<bundles_post_ra>
// kernel: attn_decoder_forward.1
= control target key start
LH: loop header
LB: loop body
LE: loop exit
PB: predicated region body
PF: predicated region fallthrough
CT: control target
= control target key end

     0   :  { %10 = vsyncpa [#allocation3], 0  ;;  %s501_s21 = smov [#allocation2]   ;;  %s502_s23 = smov 64   ;;  %s606_s0 = inlined_call_operand.vmem [shape: bf16[1,32], index: 0, kind: input, shape index: {}]   ;;  %s607_s1 = inlined_call_operand.vmem [shape: f32[1,32], index: 1, kind: input, shape index: {}]   ;;  %s608_s2 = inlined_call_operand.vmem [shape: bf16[16,32], index: 2, kind: input, shape index: {}]   ;;  %s609_s3 = inlined_call_operand.hbm [shape: bf16[160,128], index: 3, kind: input, shape index: {}]   ;;  %s610_s4 = inlined_call_operand.vmem [shape: f32[8,128], index: 4, kind: input, shape index: {}]   ;;  %s611_s5 = inlined_call_operand.vmem [shape: f32[1,128], index: 5, kind: output, shape index: {}]  }
   0x1   :  { %s21_s20 = sshll.u32 %s609_s3, 4  ;;  %s23_s22 = sshll.u32 %s501_s21, 4  ;;  %s22_s20 = int_to_ptr.hbm [resolvable:$true] %s21_s20  ;;  %s24_s22 = int_to_ptr.vmem [resolvable:$true] %s23_s22 }
   0x2   :  { %s503_s24 = smov 4  }
   0x3   :  { %29 = dma.hbm_to_vmem [thread:$0]  %s22_s20, 1280, %s24_s22, [#allocation3], %s502_s23, %s502_s23, %s503_s24  }
   0x4   :  { %499 = dma.done.wait [#allocation3], 1280  }
   0x5   :  { %500 = vsyncadd [#allocation3], 4294966016  ;;  %v437_v0 = vld [vmem:[#allocation2 + $0x8] sm:$0xff]  ;;  %v440_v1 = vld [vmem:[#allocation2 + $0x18] sm:$0xff]  ;;  %vm54_vm0 = vcmask 261120   ;;  %vm110_vm1 = vcmask 122880  }
   0x6   :  { %64 = vmatpush.bf16.msra.mxu0 %v437_v0  ;;  %100 = vmatpush.bf16.msra.mxu1 %v440_v1  ;;  %v436_v2 = vld [vmem:[#allocation2] sm:$0xff]  ;;  %v439_v3 = vld [vmem:[#allocation2 + $0x10] sm:$0xff]  ;;  %v442_v21 = vld [vmem:[#allocation2 + $0x28] sm:$0xff]  ;;  %vm129_vm2 = vcmask 130048   ;;  %s506_s11 = smov 80   ;;  %s507_s16 = smov 32  }
   0x7   :  { %v71_v4 = vld [vmem:[%s607_s1] sm:$0x1]  ;;  %172 = vmatpush.bf16.msra.mxu3 %v442_v21  ;;  %v184_v31 = vld [vmem:[%s610_s4 + $0x1] sm:$0x1]  ;;  %v444_v33 = vld [vmem:[#allocation2 + $0x38] sm:$0xff]  ;;  %s508_s19 = smov 48  }
   0x8   :  { %v78_v5 = vpack.c.bf16 %v71_v4, %v71_v4  ;;  %v37_v6 = vld [vmem:[%s606_s0] sm:$0x1]  ;;  %s504_s0 = smov 112   ;;  %v443_v34 = vld [vmem:[#allocation2 + $0x30] sm:$0xff]  ;;  %v284_v41 = vld [vmem:[%s610_s4 + $0x5] sm:$0x1] }
   0x9   :  { %v108_v9 = vld [vmem:[%s610_s4] sm:$0x1]  ;;  %v278_v42 = vld [vmem:[%s610_s4 + $0x4] sm:$0x1]  ;;  %v253_v43 = vld [vmem:[%s610_s4 + $0x3] sm:$0x1] }
   0xa   :  { %65 = vmatpush.bf16.msra.mxu0 %v436_v2  ;;  %101 = vmatpush.bf16.msra.mxu1 %v439_v3  ;;  %v438_v20 = vld [vmem:[%s608_s2] sm:$0xff]  ;;  %s505_s2 = smov 16   ;;  %vm351_vm11 = vcmask 516096   ;;  %vm372_vm12 = vcmask 523264   ;;  %vm374_vm13 = vcmask 785408   ;;  %vm376_vm14 = vcmask 916480  }
   0xb   :  { %140 = vmatpush.bf16.msra.mxu2 %v438_v20  ;;  %v441_v26 = vld [vmem:[#allocation2 + $0x20] sm:$0xff] }
   0xc   :  { %173 = vmatpush.bf16.msra.mxu3 %v441_v26  ;;  %v456_v44 = vld [vmem:[%s607_s1] ss:$0 sm:$0xff]  ;;  %v232_v50 = vld [vmem:[%s610_s4 + $0x2] sm:$0x1]  ;;  %s509_s1 = smov 96  }
   0xd   :  { %392 = vmatmul.msk.bf16.vlgmr.msra.gmra.mxu0 %vm54_vm0, %v37_v6  ;;  %401 = vmatmul.msk.bf16.vlgmr.msra.gmra.mxu1 %vm54_vm0, %v78_v5 }
   0xf   :  { %220 = vmatpush.bf16.msrb.mxu2 %v444_v33 }
  0x13   :  { %221 = vmatpush.bf16.msrb.mxu2 %v443_v34 }
  0x8a   :  { %v67_v7 = vpop.f32.mrf.mxu0  ;;  %v553_v8 = vpop.f32.mrf.mxu1 }
  0x8b   :  { %v107_v10 = vadd.f32 %v553_v8, %v67_v7 }
  0x8d   :  { %v109_v11 = vadd.f32 %v108_v9, %v107_v10 }
  0x8f   :  { %v111_v12 = vsel %vm110_vm1, %v109_v11, -inf }
  0x90   :  { %112 = vmax.xlane.f32.xlu0 %v111_v12 }
  0x92   :  { %v69_v13 = vpop.f32.mrf.mxu0  ;;  %v105_v14 = vpop.f32.mrf.mxu1 }
 0x103   :  { %v113_v15 = vpop.xlane.xlu0 %112 }
 0x104   :  { %v114_v16 = vsub.f32 %v109_v11, %v113_v15 }
 0x106   :  { %v115_v17 = vmul.f32 1.442695, %v114_v16 }
 0x108   :  { %457 = vpow2.f32 %v115_v17 }
 0x10e   :  { %v458_v18 = vpop.eup %457 }
 0x10f   :  { %v117_v19 = vsel %vm110_vm1, %v458_v18, 0.0 }
 0x110   :  { %118 = vadd.xlane.f32.xlu0 %v117_v19 }
 0x124   :  { %228 = vrot.lane.b32.xlu0 %v553_v8, %s504_s0 }
 0x183   :  { %v119_v22 = vpop.xlane.xlu0 %118 }
 0x184   :  { %459 = vrcp.f32 %v119_v22  ;;  %v446_v22 = vld [vmem:[#allocation2 + $0x48] sm:$0xff] }
 0x185   :  { %344 = vmatpush.bf16.msrb.mxu0 %v446_v22 }
 0x18a   :  { %v460_v23 = vpop.eup %459 }
 0x18b   :  { %v564_v24 = vmul.f32 %v460_v23, %v458_v18 }
 0x18d   :  { %v122_v25 = vpack.c.bf16 %v564_v24, %v564_v24 }
 0x18f   :  { %406 = vmatmul.msk.bf16.vlgmr.msra.gmra.mxu2 %vm129_vm2, %v122_v25  ;;  %v445_v25 = vld [vmem:[#allocation2 + $0x40] sm:$0xff] }
 0x190   :  { %345 = vmatpush.bf16.msrb.mxu0 %v445_v25 }
 0x196   :  { %v229_v48 = vpop.permute.xlu0 %228 }
 0x212   :  { %v142_v27 = vpop.f32.mrf.mxu2 }
 0x213   :  { %v150_v28 = vpack.c.bf16 %v142_v27, %v142_v27 }
 0x215   :  { %415 = vmatmul.msk.bf16.vlgmr.msra.gmra.mxu3 %vm54_vm0, %v150_v28 }
 0x21a   :  { %v144_v29 = vpop.f32.mrf.mxu2 }
 0x298   :  { %v175_v30 = vpop.f32.mrf.mxu3 }
 0x299   :  { %180 = vrot.lane.b32.xlu1 %v175_v30, %s505_s2 }
 0x2a0   :  { %v177_v32 = vpop.f32.mrf.mxu3 }
 0x2a1   :  { %186 = vrot.lane.b32.xlu1 %v184_v31, %s505_s2 }
 0x30b   :  { %v181_v35 = vpop.permute.xlu1 %180 }
 0x30c   :  { %v183_v36 = vadd.f32 %v181_v35, %v67_v7 }
 0x313   :  { %v187_v37 = vpop.permute.xlu1 %186 }
 0x314   :  { %v189_v38 = vadd.f32 %v187_v37, %v183_v36  ;;  %v319_v36 = vld [vmem:[%s610_s4 + $0x6] sm:$0x1] }
 0x316   :  { %v190_v39 = vmax.f32 %v189_v38, 0.0 }
 0x318   :  { %v195_v40 = vpack.c.bf16 %v190_v39, %v190_v39 }
 0x31a   :  { %197 = vrot.lane.b32.xlu2 %v195_v40, %s504_s0 }
 0x322   :  { %286 = vrot.lane.b32.xlu2 %v284_v41, %s506_s11 }
 0x32a   :  { %280 = vrot.lane.b32.xlu2 %v278_v42, %s502_s23 }
 0x332   :  { %255 = vrot.lane.b32.xlu2 %v253_v43, %s507_s16 }
 0x33a   :  { %309 = vrot.lane.b32.xlu2 %v456_v44, %s507_s16 }
 0x374   :  { %v198_v45 = vpop.permute.xlu2 %197 }
 0x375   :  { %424 = vmatmul.msk.bf16.vlgmr.msrb.gmra.mxu2 %vm54_vm0, %v198_v45 }
 0x37c   :  { %v287_v46 = vpop.permute.xlu2 %286 }
 0x37d   :  { %v289_v47 = vadd.f32 %v287_v46, %v553_v8 }
 0x37f   :  { %291 = vrot.lane.b32.xlu1 %v289_v47, %s508_s19 }
 0x384   :  { %v281_v5 = vpop.permute.xlu2 %280 }
 0x38c   :  { %v256_v10 = vpop.permute.xlu2 %255 }
 0x394   :  { %v310_v28 = vpop.permute.xlu2 %309 }
 0x3f1   :  { %v292_v2 = vpop.permute.xlu1 %291 }
 0x3f8   :  { %v223_v49 = vpop.f32.mrf.mxu2 }
 0x3f9   :  { %v231_v51 = vadd.f32 %v229_v48, %v223_v49  ;;  %v283_v6 = vadd.f32 %v281_v5, %v223_v49 }
 0x3fb   :  { %v233_v52 = vadd.f32 %v232_v50, %v231_v51  ;;  %v258_v11 = vadd.f32 %v256_v10, %v231_v51 }
 0x3fd   :  { %v425_v53 = vmul.f32 -1.442695, %v233_v52  ;;  %v426_v12 = vmul.f32 -1.442695, %v258_v11 }
 0x3ff   :  { %461 = vpow2.f32 %v425_v53 }
 0x400   :  { %v225_v54 = vpop.f32.mrf.mxu2 }
 0x405   :  { %v462_v55 = vpop.eup %461 }
 0x406   :  { %v237_v56 = vadd.f32 1.0, %v462_v55 }
 0x408   :  { %463 = vrcp.f32 %v237_v56  ;;  %v249_v60 = vand.u32 2147483648, %v237_v56  ;;  %v247_v62 = vand.u32 2147483647, %v237_v56  ;;  %vm243_vm4 = vweird.f32 %v237_v56 }
 0x40a   :  { %v250_v0 = vor.u32 1.1754944e-38, %v249_v60  ;;  %vm248_vm6 = vcmp.eq.f32.partialorder %v247_v62, 8.507059e+37 }
 0x40e   :  { %v464_v57 = vpop.eup %463 }
 0x40f   :  { %v239_v58 = vmul.f32 %v464_v57, %v237_v56  ;;  %vm244_vm3 = vweird.f32 %v464_v57 }
 0x410   :  { %vm245_vm5 = vmor %vm243_vm4, %vm244_vm3 }
 0x411   :  { %v240_v59 = vsub.f32 1.0, %v239_v58 }
 0x413   :  { %v241_v61 = vmul.f32 %v464_v57, %v240_v59 }
 0x415   :  { %v242_v63 = vadd.f32 %v464_v57, %v241_v61 }
 0x417   :  { %v246_v1 = vsel %vm245_vm5, %v464_v57, %v242_v63 }
 0x418   :  { %v251_v3 = vsel %vm248_vm6, %v250_v0, %v246_v1 }
 0x419   :  { %v294_v4 = vmul.f32 %v292_v2, %v251_v3 }
 0x41b   :  { %296 = vrot.lane.b32.xlu1 %v294_v4, %s502_s23 }
 0x48d   :  { %v297_v7 = vpop.permute.xlu1 %296 }
 0x48e   :  { %v299_v8 = vadd.f32 %v297_v7, %v283_v6 }
 0x490   :  { %465 = vtanh.f32 %v299_v8 }
 0x491   :  { %467 = vpow2.f32 %v426_v12 }
 0x496   :  { %v466_v9 = vpop.eup %465 }
 0x497   :  { %303 = vrot.lane.b32.xlu1 %v466_v9, %s509_s1  ;;  %v468_v13 = vpop.eup %467 }
 0x498   :  { %v262_v14 = vadd.f32 1.0, %v468_v13 }
 0x49a   :  { %469 = vrcp.f32 %v262_v14  ;;  %v274_v20 = vand.u32 2147483648, %v262_v14  ;;  %vm268_vm8 = vweird.f32 %v262_v14  ;;  %v272_v21 = vand.u32 2147483647, %v262_v14 }
 0x49c   :  { %v275_v26 = vor.u32 1.1754944e-38, %v274_v20  ;;  %vm273_vm10 = vcmp.eq.f32.partialorder %v272_v21, 8.507059e+37 }
 0x4a0   :  { %v470_v15 = vpop.eup %469 }
 0x4a1   :  { %v264_v16 = vmul.f32 %v470_v15, %v262_v14  ;;  %vm269_vm7 = vweird.f32 %v470_v15 }
 0x4a2   :  { %vm270_vm9 = vmor %vm268_vm8, %vm269_vm7 }
 0x4a3   :  { %v265_v17 = vsub.f32 1.0, %v264_v16 }
 0x4a5   :  { %v266_v18 = vmul.f32 %v470_v15, %v265_v17 }
 0x4a7   :  { %v267_v19 = vadd.f32 %v470_v15, %v266_v18 }
 0x4a9   :  { %v271_v23 = vsel %vm270_vm9, %v470_v15, %v267_v19 }
 0x4aa   :  { %v276_v27 = vsel %vm273_vm10, %v275_v26, %v271_v23 }
 0x4ab   :  { %v301_v29 = vsub.f32 1.0, %v276_v27  ;;  %v312_v31 = vmul.f32 %v310_v28, %v276_v27 }
 0x509   :  { %v304_v30 = vpop.permute.xlu1 %303 }
 0x50a   :  { %v306_v32 = vmul.f32 %v304_v30, %v301_v29 }
 0x50c   :  { %v313_v33 = vadd.f32 %v312_v31, %v306_v32 }
 0x50e   :  { %v318_v34 = vpack.c.bf16 %v313_v33, %v313_v33 }
 0x510   :  { %321 = vrot.lane.b32.xlu0 %v318_v34, %s509_s1 }
 0x518   :  { %365 = vrot.lane.b32.xlu0 %v313_v33, %s507_s16 }
 0x520   :  { %369 = vrot.lane.b32.xlu0 %v564_v24, %s509_s1 }
 0x582   :  { %v322_v35 = vpop.permute.xlu0 %321 }
 0x583   :  { %435 = vmatmul.msk.bf16.vlgmr.msrb.gmra.mxu0 %vm54_vm0, %v322_v35 }
 0x58a   :  { %v366_v46 = vpop.permute.xlu0 %365 }
 0x592   :  { %v370_v50 = vpop.permute.xlu0 %369 }
 0x600   :  { %v347_v37 = vpop.f32.mrf.mxu0 }
 0x601   :  { %v348_v38 = vadd.f32 %v347_v37, %v319_v36 }
 0x603   :  { %v352_v39 = vsel %vm351_vm11, %v348_v38, -inf }
 0x604   :  { %353 = vmax.xlane.f32.xlu1 %v352_v39 }
 0x608   :  { %v349_v40 = vpop.f32.mrf.mxu0 }
 0x677   :  { %v354_v41 = vpop.xlane.xlu1 %353 }
 0x678   :  { %v355_v42 = vsub.f32 %v348_v38, %v354_v41 }
 0x67a   :  { %v356_v43 = vmul.f32 1.442695, %v355_v42 }
 0x67c   :  { %471 = vpow2.f32 %v356_v43 }
 0x682   :  { %v472_v44 = vpop.eup %471 }
 0x683   :  { %v358_v45 = vsel %vm351_vm11, %v472_v44, 0.0 }
 0x684   :  { %359 = vadd.xlane.f32.xlu2 %v358_v45 }
 0x6f7   :  { %v360_v24 = vpop.xlane.xlu2 %359 }
 0x6f8   :  { %473 = vlog2.f32 %v360_v24 }
 0x6fe   :  { %v474_v47 = vpop.eup %473 }
 0x6ff   :  { %v362_v48 = vmul.f32 0.6931472, %v474_v47 }
 0x701   :  { %v363_v49 = vsub.f32 %v355_v42, %v362_v48 }
 0x703   :  { %v373_v51 = vsel %vm372_vm12, %v363_v49, %v366_v46 }
 0x704   :  { %v375_v52 = vsel %vm374_vm13, %v373_v51, %v370_v50 }
 0x705   :  { %v377_v53 = vsel %vm376_vm14, %v375_v52, 0.0 }
 0x706   :  { %378 = vst [vmem:[%s611_s5] sm:$0x1] %v377_v53 }
 0x707   :  { %383 = vsyncpa [#allocation3], 1 }

</bundles_post_ra>
